<compile_context>
chip_gen: v6e
topology: v6e:2x2x1
jax: 0.10.0
libtpu: 0.0.40
codegen_flags: <defaults>
</compile_context>

<pallas_src>
import math

import jax
import jax.numpy as jnp
from jax.experimental import pallas as pl
from jax.experimental.pallas import tpu as pltpu


# ---------------- kernel ----------------

def _add_bias_kernel(x_ref, b_ref, o_ref):
    # x_ref: (TR, TL); b_ref: (1, TL) row bias broadcast over sublanes.
    # Pure VPU broadcast-add; the kernel is HBM-bandwidth bound.
    o_ref[...] = x_ref[...] + b_ref[...]


# ---------------- tiling ----------------

_BLOCK_BYTES = 4 * 1024 * 1024     # padded VMEM bytes per x block (~4 MiB)
_MIN_GRID_STEPS = 4                # keep the pipeline fed / both v7x TCs busy
_VMEM_LIMIT = 32 * 1024 * 1024     # explicit (v5e scoped default is only 16 MiB)


def _round_up(v, m):
    return -(-v // m) * m


def _choose_tiles(R, L, itemsize):
    """Pick (tr, tl): tr is full-dim or a multiple of 8, tl full-dim or a
    multiple of 128, padded block bytes ~<= _BLOCK_BYTES, grid >= 4 steps when
    the array is large enough."""
    # Sublane tile: full dim (always legal) or a multiple of 8.
    tr = R if R <= 1024 else 1024
    tr_pad = _round_up(tr, 8)
    # Lane tile: fill the byte budget given tr; multiple of 128 (or full dim).
    lane_budget = max(128, (_BLOCK_BYTES // (tr_pad * itemsize)) // 128 * 128)
    tl = L if L <= lane_budget else lane_budget

    # Guarantee enough grid steps for DMA/compute overlap and v7x megacore.
    if pl.cdiv(R, tr) * pl.cdiv(L, tl) < _MIN_GRID_STEPS:
        if L >= _MIN_GRID_STEPS * 128:
            tl = max(128, (L // _MIN_GRID_STEPS) // 128 * 128)
        elif R >= _MIN_GRID_STEPS * 8:
            tr = max(8, (R // _MIN_GRID_STEPS) // 8 * 8)
    return tr, tl


def _pallas_bias_add(x2d, bias_row, *, donate=False):
    """x2d: (R, L); bias_row: (1, L) already in x2d.dtype."""
    R, L = x2d.shape
    tr, tl = _choose_tiles(R, L, x2d.dtype.itemsize)
    grid = (pl.cdiv(R, tr), pl.cdiv(L, tl))

    return pl.pallas_call(
        _add_bias_kernel,
        out_shape=jax.ShapeDtypeStruct((R, L), x2d.dtype),
        grid_spec=pltpu.PrefetchScalarGridSpec(
            num_scalar_prefetch=0,
            grid=grid,
            in_specs=[
                pl.BlockSpec((tr, tl), lambda i, j: (i, j)),
                pl.BlockSpec((1, tl), lambda i, j: (0, j)),
            ],
            out_specs=pl.BlockSpec((tr, tl), lambda i, j: (i, j)),
        ),
        compiler_params=pltpu.CompilerParams(
            dimension_semantics=("parallel", "parallel"),
            vmem_limit_bytes=_VMEM_LIMIT,
        ),
        input_output_aliases=({0: 0} if donate else {}),
    )(x2d, bias_row)


# ---------------- module ----------------

class AddBias:
    """JAX/Pallas equivalent of the PyTorch AddBias module."""

    def __init__(self, bias, min_pallas_bytes=1 << 20, donate_input=False):
        # PyTorch stores bias.unsqueeze(1) -> shape (C, 1); keep the same.
        self._bias = jnp.asarray(bias).reshape(-1, 1)
        # Below this size, XLA's fused add is already at roofline -> skip Pallas.
        self._min_pallas_bytes = min_pallas_bytes
        # Set True only if the caller never reuses x after the call.
        self._donate = donate_input
        # Cache of expanded / cast bias rows keyed by (HW, pack, dtype).
        self._bias_cache = {}

    # Cached row bias of shape (1, pack * C * hw) in `dtype`.
    def _feat_bias(self, hw, pack, dtype):
        key = (int(hw), int(pack), jnp.dtype(dtype).name)
        b = self._bias_cache.get(key)
        if b is None:
            b = self._bias.reshape(-1).astype(dtype)        # (C,)
            if hw > 1:
                b = jnp.repeat(b, hw)                        # (C*HW,)
            if pack > 1:
                b = jnp.tile(b, pack)                        # (pack*C*HW,)
            b = b.reshape(1, -1)
            self._bias_cache[key] = b
        return b

    def __call__(self, x):
        C = self._bias.shape[0]
        out_dtype = jnp.promote_types(x.dtype, self._bias.dtype)

        if x.ndim == 2:
            N, Cx = x.shape
            assert Cx == C, "channel mismatch"
            hw = 1
            lead_shape = (N, C)
        elif x.ndim == 4:
            N, Cx, H, W = x.shape
            assert Cx == C, "channel mismatch"
            hw = H * W
            lead_shape = (N, C, H, W)
        else:
            raise ValueError("AddBias expects 2-D or 4-D input")

        R, F = N, C * hw
        xr = x.reshape(R, F).astype(out_dtype)   # free reshape; no-op cast if same dtype

        # Tiny inputs: plain fused XLA add beats any pallas_call launch.
        if xr.size * xr.dtype.itemsize < self._min_pallas_bytes:
            out = xr + self._feat_bias(hw, 1, out_dtype)
            return out.reshape(lead_shape)

        if F % 128 == 0:
            # Already lane-dense.
            out = _pallas_bias_add(xr, self._feat_bias(hw, 1, out_dtype),
                                   donate=self._donate)
        else:
            k = 128 // math.gcd(F, 128)          # smallest k with k*F % 128 == 0
            if R % k == 0 and R >= 8 * k:
                # Lane-pack k rows together (free reshape): dense lanes, full sublanes.
                xp = xr.reshape(R // k, k * F)
                out = _pallas_bias_add(xp, self._feat_bias(hw, k, out_dtype),
                                       donate=self._donate).reshape(R, F)
            elif F >= 128:
                # Only the last partial vreg per row is masked; still worth Pallas.
                out = _pallas_bias_add(xr, self._feat_bias(hw, 1, out_dtype),
                                       donate=self._donate)
            else:
                # Lane width < 128 and rows don't pack cleanly: masked vst.msk would
                # dominate -> XLA's fused add (roofline for a bias add) is faster.
                out = xr + self._feat_bias(hw, 1, out_dtype)
        return out.reshape(lead_shape)


# ---------------- demo / check ----------------

if __name__ == "__main__":
    key = jax.random.PRNGKey(0)
    k_b, k_x4, k_x4b, k_x4c, k_x2, k_x2b = jax.random.split(key, 6)

    C = 4
    bias = jax.random.normal(k_b, (C,), dtype=jnp.float32)
    # min_pallas_bytes=0 forces the Pallas path even at demo sizes.
    mod = AddBias(bias, min_pallas_bytes=0)

    # 4-D NCHW, HW multiple of 128 -> (N, C*HW) row-bias path, grid (1, 4).
    x4 = jax.random.normal(k_x4, (2, C, 16, 16), dtype=jnp.float32)
    y4 = jax.block_until_ready(mod(x4))
    ref4 = x4 + bias.reshape(1, C, 1, 1)
    assert jnp.allclose(y4, ref4, atol=1e-6), "4D mismatch"

    # 4-D with larger HW -> multi-step lane grid (F = 8192, tl = 2048).
    x4b = jax.random.normal(k_x4b, (2, C, 32, 64), dtype=jnp.float32)
    y4b = jax.block_until_ready(mod(x4b))
    ref4b = x4b + bias.reshape(1, C, 1, 1)
    assert jnp.allclose(y4b, ref4b, atol=1e-6), "4D (large) mismatch"

    # 4-D with odd spatial size (7x7): F = 196 >= 128, direct Pallas path.
    x4c = jax.random.normal(k_x4c, (2, C, 7, 7), dtype=jnp.float32)
    y4c = jax.block_until_ready(mod(x4c))
    ref4c = x4c + bias.reshape(1, C, 1, 1)
    assert jnp.allclose(y4c, ref4c, atol=1e-6), "4D (odd HW) mismatch"

    # 2-D, N too small to lane-pack (8 % 32 != 0) -> XLA fallback (no vst.msk).
    x2 = jax.random.normal(k_x2, (8, C), dtype=jnp.float32)
    y2 = jax.block_until_ready(mod(x2))
    ref2 = x2 + bias.reshape(1, C)
    assert jnp.allclose(y2, ref2, atol=1e-6), "2D mismatch"

    # 2-D lane-packing path: N=256, C=4 -> packed (8, 128) slab, full sublanes.
    x2b = jax.random.normal(k_x2b, (256, C), dtype=jnp.float32)
    y2b = jax.block_until_ready(mod(x2b))
    ref2b = x2b + bias.reshape(1, C)
    assert jnp.allclose(y2b, ref2b, atol=1e-6), "2D (packed) mismatch"

    # Default-threshold module (tiny-input bypass) also matches.
    mod_default = AddBias(bias)
    y2c = jax.block_until_ready(mod_default(x2))
    assert jnp.allclose(y2c, ref2, atol=1e-6), "bypass mismatch"

    print("KERNEL_OK")
</pallas_src>

<mosaic_0001>
module attributes {stable_mosaic.version = 11 : i64} {
  func.func @_add_bias_kernel(%arg0: i32, %arg1: i32, %arg2: memref<2x256xf32, #tpu.memory_space<vmem>>, %arg3: memref<1x256xf32, #tpu.memory_space<vmem>>, %arg4: memref<2x256xf32, #tpu.memory_space<vmem>>) attributes {dimension_semantics = [#tpu.dimension_semantics<parallel>, #tpu.dimension_semantics<parallel>], iteration_bounds = array<i64: 1, 4>, scalar_prefetch = 0 : i64, scratch_operands = 0 : i64, tpu.core_type = #tpu.core_type<tc>, window_params = [{transform_indices = @transform_0, window_bounds = array<i64: 2, 256>}, {transform_indices = @transform_1, window_bounds = array<i64: 1, 256>}, {transform_indices = @transform_2, window_bounds = array<i64: 2, 256>}]} {
    %c0 = arith.constant 0 : index
    %c0_0 = arith.constant 0 : index
    %0 = vector.load %arg2[%c0, %c0_0] : memref<2x256xf32, #tpu.memory_space<vmem>>, vector<2x256xf32>
    %c0_1 = arith.constant 0 : index
    %c0_2 = arith.constant 0 : index
    %1 = vector.load %arg3[%c0_1, %c0_2] : memref<1x256xf32, #tpu.memory_space<vmem>>, vector<1x256xf32>
    %2 = vector.broadcast %1 : vector<1x256xf32> to vector<2x256xf32>
    %3 = arith.addf %0, %2 : vector<2x256xf32>
    %c0_3 = arith.constant 0 : index
    %c0_4 = arith.constant 0 : index
    %4 = vector.load %arg4[%c0_3, %c0_4] : memref<2x256xf32, #tpu.memory_space<vmem>>, vector<2x256xf32>
    tpu.vector_store %arg4[%c0_3, %c0_4], %3 {strides = array<i32>} : memref<2x256xf32, #tpu.memory_space<vmem>>, vector<2x256xf32>,
    return
  }
  func.func @transform_0(%arg0: i32, %arg1: i32) -> (i32, i32) {
    %c0_i32 = arith.constant 0 : i32
    return %arg0, %arg1 : i32, i32
  }
  func.func @transform_1(%arg0: i32, %arg1: i32) -> (i32, i32) {
    %c0_i32 = arith.constant 0 : i32
    %c0_i32_0 = arith.constant 0 : i32
    return %c0_i32, %arg1 : i32, i32
  }
  func.func @transform_2(%arg0: i32, %arg1: i32) -> (i32, i32) {
    %c0_i32 = arith.constant 0 : i32
    return %arg0, %arg1 : i32, i32
  }
}

</mosaic_0001>

<bundles_post_ra>
// kernel: tpu_custom_call.1
= control target key start
LH: loop header
LB: loop body
LE: loop exit
PB: predicated region body
PF: predicated region fallthrough
CT: control target
= control target key end

     0   :  { %7 = vsyncpa [#allocation3], 0  ;;  %s778_s0 = inlined_call_operand.hbm [shape: f32[2,1024], index: 0, kind: input, shape index: {}]   ;;  %s779_s1 = inlined_call_operand.hbm [shape: f32[1,1024], index: 1, kind: input, shape index: {}]   ;;  %s780_s2 = inlined_call_operand.hbm [shape: f32[2,1024], index: 2, kind: output, shape index: {}]  }
   0x1   :  { %9 = vsyncpa [#allocation3 + $0x1], 0 }
   0x2   :  { %10 = vsyncpa [#allocation6], 0 }
   0x3   :  { %12 = vsyncpa [#allocation6 + $0x1], 0 }
   0x4   :  { %13 = vsyncpa [#allocation4], 0 }
   0x5   :  { %15 = vsyncpa [#allocation4 + $0x1], 0  ;;  %s616_s9 = smov 0   ;;  %s618_s10 = smov 0  }
   0x6   :  { %s620_s11 = smov 0   ;;  %s622_s12 = smov 0  }
   0x7   :  { %s624_s13 = smov 0   ;;  %s626_s14 = smov 0  }
   0x8 LB: > { %s365_s15 = sadd.s32 4294967295, %s595_s14   ;;  %s366_s16 = sadd.s32 4294967294, %s595_s14   ;;  %s595_s14 = sphi %s626_s14, %s21_s14   ;;  %s591_s13 = sphi %s624_s13, %s791_s13   ;;  %s587_s12 = sphi %s622_s12, %s790_s12   ;;  %s583_s11 = sphi %s620_s11, %s789_s11   ;;  %s579_s10 = sphi %s618_s10, %s788_s10   ;;  %s575_s9 = sphi %s616_s9, %s787_s9  }
   0x9   : > { %s30_s17 = sadd.s32 1, %s591_s13  ;;  %s42_s18 = sadd.s32 1, %s583_s11 }
   0xa   : > { %p31_p0 = scmp.ge.s32.totalorder %s30_s17, 4  ;;  %p49_p1 = scmp.ne.s32.totalorder %s583_s11, %s579_s10 }
   0xb   : > { %p50_p2 = scmp.eq.s32.totalorder %s595_s14, 0  ;;  %p55_p3 = scmp.ne.s32.totalorder %s579_s10, %s575_s9 }
   0xc   : > { %s793_s17 = smov (%p31_p0, %s30_s17), 0  ;;  %p56_p5 = scmp.eq.s32.totalorder %s365_s15, 0 }
   0xd   : > { %p657_p4 = por %p50_p2, %p49_p1  ;;  %s38_s20 = ssub.s32 %s591_s13, %s793_s17 }
   0xe   : > { %p107_p6 = scmp.eq.s32.totalorder %s365_s15, 3  ;;  %p40_p7 = scmp.eq.s32.totalorder %s38_s20, 0 }
   0xf   : > { %p663_p8 = por %p56_p5, %p55_p3  ;;  %p113_p10 = scmp.eq.s32.totalorder %s366_s16, 3 }
  0x10   : > { %p667_p9 = por %p107_p6, %p49_p1  ;;  %p404_p12 = scmp.lt.s32.totalorder %s595_s14, 4 }
  0x11   : > { %s672_s23 = scalar_select %p40_p7, %s583_s11, %s42_s18  }
  0x12   : > { %p674_p11 = por %p113_p10, %p55_p3  ;;  %s680_s25 = sand.u32 1, %s583_s11  }
  0x13   : > { %s369_s26 = sshll.u32 %s680_s25, 2  ;;  %s384_s27 = sshll.u32 %s591_s13, 6 }
  0x14   : > { %s145_s30 = scalar_lea.hbm %s778_s0, %s384_s27  ;;  %s137_s3 = scalar_lea.vmem [#allocation2], %s369_s26 }
  0x15   : > { %s147_s4 = sshll.u32 %s137_s3, 4  ;;  %p689_p13 = pnand %p404_p12, %p657_p4  ;;  %s148_s4 = int_to_ptr.vmem [resolvable:$true] %s147_s4 }
  0x16   : > { %p375_p0 = scmp.ge.s32.totalorder %s595_s14, 1  ;;  %p171_p1 = scmp.lt.s32.totalorder %s595_s14, 5 }
  0x17   : > { %s134_s6 = scalar_lea.sflag [#allocation3], %s680_s25  ;;  %p457_p2 = pneg %p689_p13 }
  0x18   : > { %s468_s7 = scalar_lea.vmem %s148_s4, 64  ;;  %s597_s8 = smov [#allocation2]  }
  0x19   : > { %p469_p3 = scmp.ne.s32.totalorder %s148_s4, %s468_s7  ;;  %s473_s15 = sshll.u32 %s597_s8, 4  ;;  %s474_s15 = int_to_ptr.vmem [resolvable:$false] %s473_s15 }
  0x1a   : > { %s475_s16 = scalar_lea.vmem %s474_s15, 128  ;;  %p476_p4 = scmp.lt.s32.totalorder %s148_s4, %s474_s15 }
  0x1b   : > { %p471_p5 = pnand %p469_p3, %p457_p2  ;;  %p477_p7 = scmp.lt.s32.totalorder %s475_s16, %s468_s7 }
  0x1d   : > { %p472_p6 = pneg %p471_p5  ;;  %p478_p10 = por %p477_p7, %p476_p4 }
  0x1f   : > { %p479_p12 = pnand %p478_p10, %p472_p6 }
  0x21   : > { %482 = shalt.err (!%p479_p12)
}
  0x22   : > { %396 = dma.hbm_to_vmem [thread:$0]  (!%p689_p13), %s145_s30, 64, %s148_s4, %s134_s6  }
  0x23   : > { %p707_p3 = pnand %p375_p0, %p171_p1  ;;  %s372_s19 = sshll.u32 %s680_s25, 1 }
  0x24   : > { %s385_s20 = sshll.u32 %s591_s13, 5  ;;  %s158_s29 = scalar_lea.vmem [#allocation5], %s372_s19 }
  0x25   : > { %s164_s28 = scalar_lea.hbm %s779_s1, %s385_s20  ;;  %s166_s3 = sshll.u32 %s158_s29, 4  ;;  %s167_s3 = int_to_ptr.vmem [resolvable:$true] %s166_s3 }
  0x26   : > { %s155_s7 = scalar_lea.sflag [#allocation6], %s680_s25  ;;  %s496_s8 = scalar_lea.vmem %s167_s3, 32 }
  0x27   : > { %p497_p5 = scmp.ne.s32.totalorder %s167_s3, %s496_s8  ;;  %s598_s30 = smov [#allocation5]  }
  0x28   : > { %s501_s4 = sshll.u32 %s598_s30, 4  ;;  %s502_s4 = int_to_ptr.vmem [resolvable:$false] %s501_s4 }
  0x29   : > { %p499_p6 = pnand %p497_p5, %p457_p2  ;;  %s503_s6 = scalar_lea.vmem %s502_s4, 64 }
  0x2a   : > { %p504_p0 = scmp.lt.s32.totalorder %s167_s3, %s502_s4  ;;  %p505_p1 = scmp.lt.s32.totalorder %s503_s6, %s496_s8 }
  0x2b   : > { %p500_p4 = pneg %p499_p6 }
  0x2c   : > { %p506_p7 = por %p505_p1, %p504_p0 }
  0x2e   : > { %p507_p10 = pnand %p506_p7, %p500_p4 }
  0x30   : > { %510 = shalt.err (!%p507_p10)
}
  0x31   : > { %399 = dma.hbm_to_vmem [thread:$0]  (!%p689_p13), %s164_s28, 32, %s167_s3, %s155_s7  }
  0x32   : > { %175 = sbr.rel (%p707_p3) target bundleno = 86 (0x56), region = 28  ;;  %s725_s25 = sand.u32 (!%p707_p3), 1, %s579_s10  }
  0x33   : > { %s376_s15 = sshll.u32 (!%p707_p3), %s725_s25, 2  ;;  %s178_s16 = scalar_lea.sflag (!%p707_p3), [#allocation3], %s725_s25 }
  0x34   : > { %s181_s19 = scalar_lea.vmem (!%p707_p3), [#allocation2], %s376_s15 }
  0x37   : > { %562 = dma.done.wait (%p663_p8), %s178_s16, 64  }
  0x38   : > { %564 = vsyncadd (%p663_p8), %s178_s16, 4294967232  ;;  %s377_s5 = sshll.u32 %s725_s25, 1  ;;  %s187_s18 = scalar_lea.sflag [#allocation6], %s725_s25 }
  0x39   : > { %s190_s20 = scalar_lea.vmem [#allocation5], %s377_s5 }
  0x3a   : > { %566 = dma.done.wait (%p663_p8), %s187_s18, 32  }
  0x3b   : > { %568 = vsyncadd (%p663_p8), %s187_s18, 4294967264  ;;  %v222_v0 = vlaneseq  ;;  %v599_v1 = vmov 1983009808   ;;  %v220_v7 = vld [vmem:[%s190_s20] sm:$0x3]  ;;  %s215_s26 = scalar_lea.vmem [#allocation7], %s376_s15 }
  0x3c   : > { %v232_v2 = vunpack.c.l.s4 %v599_v1  ;;  %v219_v12 = vld [vmem:[%s181_s19] sm:$0xf]  ;;  %s258_s27 = sshll.u32 %s215_s26, 4  ;;  %s386_s21 = sshll.u32 %s587_s12, 6  ;;  %s259_s27 = int_to_ptr.vmem [resolvable:$true] %s258_s27 }
  0x3d   : > { %v223_v3 = vshrl.u32 %v222_v0, 7  ;;  %s256_s3 = scalar_lea.hbm %s780_s2, %s386_s21  ;;  %s242_s7 = scalar_lea.sflag [#allocation4], %s725_s25 }
  0x3e   : > { %v233_v6 = vunpack.c.0.s8 %v232_v2  ;;  %s511_s8 = scalar_lea.vmem %s259_s27, 64  ;;  %s600_s30 = smov [#allocation7]  }
  0x3f   : > { %v224_v4 = vsub.s32 0, %v223_v3  ;;  %v228_v5 = vsub.s32 1, %v223_v3  ;;  %p512_p8 = scmp.ne.s32.totalorder %s259_s27, %s511_s8  ;;  %s515_s4 = sshll.u32 %s600_s30, 4  ;;  %s516_s4 = int_to_ptr.vmem [resolvable:$false] %s515_s4 }
  0x40   : > { %v236_v10 = vsub.s32 %v233_v6, %v223_v3  ;;  %s517_s6 = scalar_lea.vmem %s516_s4, 128  ;;  %p518_p12 = scmp.lt.s32.totalorder %s259_s27, %s516_s4 }
  0x41   : > { %v225_v8 = vrot.slane %v220_v7, %v224_v4  ;;  %v229_v9 = vrot.slane %v220_v7, %v228_v5  ;;  %p513_p13 = pnand %p512_p8, %p667_p9  ;;  %p519_p3 = scmp.lt.s32.totalorder %s517_s6, %s511_s8 }
  0x43   : > { %v230_v11 = vcombine.low %v225_v8, %v229_v9  ;;  %p514_p2 = pneg %p513_p13  ;;  %p520_p5 = por %p519_p3, %p518_p12 }
  0x45   : > { %v237_v13 = vrot.slane %v230_v11, %v236_v10  ;;  %p521_p6 = pnand %p520_p5, %p514_p2 }
  0x47   : > { %v239_v14 = vadd.f32 %v237_v13, %v219_v12 }
  0x49   : > { %240 = vst [vmem:[%s215_s26] sm:$0xf] %v239_v14 }
  0x4a   : > { %524 = shalt.err (!%p521_p6)
}
  0x4b   : > { %s525_s12 = scalar_lea.hbm %s256_s3, 64  ;;  %s529_s16 = scalar_lea.hbm %s780_s2, 256 }
  0x4c   : > { %p526_p4 = scmp.ne.s32.totalorder %s256_s3, %s525_s12  ;;  %p530_p7 = scmp.lt.s32.totalorder %s256_s3, %s780_s2 }
  0x4d   : > { %p531_p10 = scmp.lt.s32.totalorder %s529_s16, %s525_s12 }
  0x4e   : > { %p527_p0 = pnand %p526_p4, %p667_p9 }
  0x4f   : > { %p532_p8 = por %p531_p10, %p530_p7 }
  0x50   : > { %p528_p1 = pneg %p527_p0 }
  0x52   : > { %p533_p13 = pnand %p532_p8, %p528_p1 }
  0x54   : > { %536 = shalt.err (!%p533_p13)
}
  0x55   : > { %391 = dma.vmem_to_hbm [thread:$0]  (%p667_p9), %s259_s27, 64, %s256_s3, %s242_s7  }
  0x56 PF: > { %p405_p2 = scmp.ge.s32.totalorder %s595_s14, 2  ;;  %s270_s18 = sand.u32 1, %s575_s9  }
  0x57   : > { %s271_s20 = scalar_lea.sflag [#allocation4], %s270_s18 }
  0x58   : > { %p401_p12 = pnand %p405_p2, %p674_p11 }
  0x5a   : > { %p402_p3 = pneg %p401_p12 }
  0x5c   : > { %570 = dma.done.wait (%p402_p3), %s271_s20, 64  }
  0x5d   : > { %572 = vsyncadd (%p402_p3), %s271_s20, 4294967232  ;;  %s21_s14 = sadd.s32 1, %s595_s14   ;;  %s787_s9 = smov %s579_s10 }
  0x5e   : > { %p18_p5 = scmp.ge.s32.totalorder %s21_s14, 6   ;;  %s788_s10 = smov %s583_s11 }
  0x5f   : > { %s789_s11 = smov %s672_s23  ;;  %s790_s12 = smov %s591_s13 }
  0x60   : > { %s791_s13 = smov %s793_s17  ;;  %20 = sbr.rel (!%p18_p5) target bundleno = 8 (0x8), region = 86 }
  0x65   :  { %276 = vsyncpa [#allocation3], 1 }
  0x66   :  { %278 = vsyncpa [#allocation3 + $0x1], 1 }
  0x67   :  { %279 = vsyncpa [#allocation6], 1 }
  0x68   :  { %281 = vsyncpa [#allocation6 + $0x1], 1 }
  0x69   :  { %282 = vsyncpa [#allocation4], 1 }
  0x6a   :  { %284 = vsyncpa [#allocation4 + $0x1], 1 }

</bundles_post_ra>
